<compile_context>
chip_gen: v5e
topology: v5e:2x2
jax: 0.10.0
libtpu: 0.0.40
codegen_flags: <defaults>
</compile_context>

<pallas_src>
import jax
import jax.numpy as jnp
from jax.experimental import pallas as pl
from jax.experimental.pallas import tpu as pltpu


NEG_INF = -1e30  # additive mask sentinel (kept in f32)


def _leaky_relu(x, negative_slope):
    return jnp.where(x > 0, x, negative_slope * x)


def make_gnn4_kernel(n_layers, t_past):
    """Fused kernel: all GAT layers of one timestep, iterated over grid=(T_future,)."""

    def kernel(*refs):
        # refs = x, adj_bias, (w, att, bias) * n_layers, out, x_state
        x_ref = refs[0]
        adj_ref = refs[1]
        p_refs = refs[2:2 + 3 * n_layers]
        out_ref = refs[2 + 3 * n_layers]
        x_state = refs[2 + 3 * n_layers + 1]

        t = pl.program_id(0)

        @pl.when(t == 0)
        def _init():
            x_state[...] = x_ref[...]
            out_ref[...] = jnp.zeros_like(out_ref)

        adj_bias = adj_ref[...]  # 0 on edges, -1e30 off edges  [N, N]

        def gat(h_in, layer):
            """GATConv (heads=1, concat=True, negative_slope=0.2, bias=True)."""
            w_ref = p_refs[3 * layer]
            att_ref = p_refs[3 * layer + 1]       # [F_out, 2] = [att_dst^T | att_src^T]
            bias_ref = p_refs[3 * layer + 2]      # [1, F_out]
            h = jnp.dot(h_in, w_ref[...], preferred_element_type=jnp.float32)
            # attention scalars via one tiny MXU matmul (frees VPU/XLU slots)
            a = jnp.dot(h, att_ref[...], preferred_element_type=jnp.float32)  # [N, 2]
            # e[i, j] = leaky_relu(a_dst[i] + a_src[j], 0.2) for edge j -> i
            e = a[:, 0:1] + jnp.transpose(a[:, 1:2])
            e = jnp.where(e > 0, e, 0.2 * e)
            e = e + adj_bias
            # masked row softmax over source neighbors j
            e_max = jnp.max(e, axis=-1, keepdims=True)
            p = jnp.exp(e - e_max)
            denom = jnp.sum(p, axis=-1, keepdims=True)
            # self-loops guarantee denom >= exp(0 - e_max) > 0; cheap NaN guard
            denom = jnp.maximum(denom, 1e-20)
            alpha = p * pl.reciprocal(denom, approx=True)
            return jnp.dot(alpha, h, preferred_element_type=jnp.float32) + bias_ref[...]

        xi = x_state[...]                                  # [N, T_past]
        y_tm = xi[:, t_past - 1:t_past]                    # last column == previous pred
        x_mod = xi[:, 1:] - xi[:, :-1]                     # [N, T_past - 1]

        layer_outputs = [x_mod]
        h = _leaky_relu(gat(x_mod, 0), 0.01)               # F.leaky_relu default slope
        layer_outputs.append(h)
        for li in range(1, n_layers - 2):
            h = _leaky_relu(gat(h, li), 0.01)
            layer_outputs.append(h)
        temp = jnp.concatenate(layer_outputs, axis=1)      # stays in vregs / VMEM
        x_temp = _leaky_relu(gat(temp, n_layers - 2), 0.01)
        y_new = y_tm + gat(x_temp, n_layers - 1)           # [N, 1]

        # write column t of the resident [N, T_future] output block
        col = jax.lax.broadcasted_iota(jnp.int32, out_ref.shape, 1)
        out_ref[...] = jnp.where(col == t, y_new, out_ref[...])

        # autoregressive state update (carried in VMEM scratch across grid steps)
        if t_past == 1:
            x_state[...] = y_new
        else:
            x_state[...] = jnp.concatenate([xi[:, 1:], y_new], axis=1)

    return kernel


def gnn4_forward(x, t_future, adj_bias, packed_params):
    """Fused GNN4 forward. x: [N, T_past]; adj_bias: [N, N]; returns [N, T_future]."""
    n, t_past = x.shape
    n_layers = len(packed_params)

    inputs = [x, adj_bias]
    in_specs = [
        pl.BlockSpec(x.shape, lambda t: (0, 0)),
        pl.BlockSpec(adj_bias.shape, lambda t: (0, 0)),
    ]
    for (w, att, bias) in packed_params:
        inputs += [w, att, bias]
        in_specs += [
            pl.BlockSpec(w.shape, lambda t: (0, 0)),
            pl.BlockSpec(att.shape, lambda t: (0, 0)),
            pl.BlockSpec(bias.shape, lambda t: (0, 0)),
        ]

    return pl.pallas_call(
        make_gnn4_kernel(n_layers, t_past),
        out_shape=jax.ShapeDtypeStruct((n, t_future), jnp.float32),
        grid_spec=pltpu.PrefetchScalarGridSpec(
            num_scalar_prefetch=0,
            grid=(t_future,),
            in_specs=in_specs,
            out_specs=pl.BlockSpec((n, t_future), lambda t: (0, 0)),
            scratch_shapes=[
                pltpu.VMEM((n, t_past), jnp.float32),  # sliding x_init window
            ],
        ),
        compiler_params=pltpu.CompilerParams(
            dimension_semantics=("arbitrary",),  # sequential autoregressive chain
        ),
    )(*inputs)


# ----------------------------- pure-JAX reference ---------------------------

def _gat_conv_ref(x, params, adj):
    w, att_src, att_dst, bias = params
    h = x @ w
    a_src = jnp.sum(h * att_src, axis=-1, keepdims=True)
    a_dst = jnp.sum(h * att_dst, axis=-1, keepdims=True)
    e = a_dst + a_src.T
    e = jnp.where(e > 0, e, 0.2 * e)
    e = jnp.where(adj > 0, e, -jnp.inf)
    alpha = jax.nn.softmax(e, axis=-1)
    return alpha @ h + bias


def _gnn4_ref(x, t_future, adj, params_list):
    t_past = x.shape[1]
    x_init = x
    y_tm = x[:, -1:]
    preds = []
    for _ in range(t_future):
        x_mod = x_init[:, 1:] - x_init[:, :-1]
        outs = [x_mod]
        h = _leaky_relu(_gat_conv_ref(x_mod, params_list[0], adj), 0.01)
        outs.append(h)
        for p in params_list[1:-2]:
            h = _leaky_relu(_gat_conv_ref(h, p, adj), 0.01)
            outs.append(h)
        temp = jnp.concatenate(outs, axis=1)
        x_temp = _leaky_relu(_gat_conv_ref(temp, params_list[-2], adj), 0.01)
        y_new = y_tm + _gat_conv_ref(x_temp, params_list[-1], adj)
        preds.append(y_new)
        x_init = y_new if t_past == 1 else jnp.concatenate([x_init[:, 1:], y_new], axis=1)
        y_tm = y_new
    return jnp.concatenate(preds, axis=1)


def init_gat_params(key, f_in, f_out):
    """Deterministic synthetic GATConv params (heads=1)."""
    k1, k2, k3 = jax.random.split(key, 3)
    w = jax.random.normal(k1, (f_in, f_out), jnp.float32) / jnp.sqrt(float(f_in))
    att_src = 0.1 * jax.random.normal(k2, (1, f_out), jnp.float32)
    att_dst = 0.1 * jax.random.normal(k3, (1, f_out), jnp.float32)
    bias = jnp.zeros((1, f_out), jnp.float32)  # PyG GATConv bias init = zeros
    return (w, att_src, att_dst, bias)


if __name__ == "__main__":
    # Small shapes consistent with GNN4.forward:
    #   data.x : [N, T_past] = [16, 5]  (in_channels = 5), data.y : [N, 3]
    N = 16
    in_channels = 5
    hidden_channels = 8
    num_layers = 4
    T_future = 3

    key = jax.random.PRNGKey(0)
    kx, kp = jax.random.split(key)
    x = jax.random.normal(kx, (N, in_channels), jnp.float32)

    # Deterministic ring graph (both directions); dense adj[dst, src] = 1,
    # plus self-loops (GATConv add_self_loops=True).
    idx = jnp.arange(N)
    src = jnp.concatenate([idx, (idx + 1) % N])
    dst = jnp.concatenate([(idx + 1) % N, idx])
    adj = jnp.zeros((N, N), jnp.float32).at[dst, src].set(1.0)
    adj = adj.at[idx, idx].set(1.0)
    # additive mask bias: 0 on edges, -1e30 off edges (kept f32)
    adj_bias = jnp.where(adj > 0, 0.0, NEG_INF).astype(jnp.float32)

    # Parameter shapes matching GNN4.__init__
    dims = [(in_channels - 1, hidden_channels)]
    for _ in range(num_layers - 3):
        dims.append((hidden_channels, hidden_channels))
    temp_num_channel = hidden_channels * (num_layers - 2) + in_channels - 1
    dims.append((temp_num_channel, temp_num_channel))
    dims.append((temp_num_channel, 1))

    keys = jax.random.split(kp, len(dims))
    raw_params = [init_gat_params(k, fi, fo) for k, (fi, fo) in zip(keys, dims)]
    # pack attention vectors into one [F_out, 2] matrix per layer:
    # column 0 = att_dst^T, column 1 = att_src^T  (consumed by one MXU matmul)
    packed_params = [
        (w, jnp.concatenate([att_dst.T, att_src.T], axis=1), bias)
        for (w, att_src, att_dst, bias) in raw_params
    ]

    y_pred = gnn4_forward(x, T_future, adj_bias, packed_params)
    jax.block_until_ready(y_pred)

    assert y_pred.shape == (N, T_future), y_pred.shape
    assert bool(jnp.all(jnp.isfinite(y_pred)))

    # correctness vs. pure-JAX reference (loose tol: kernel uses approx reciprocal)
    y_ref = _gnn4_ref(x, T_future, adj, raw_params)
    max_err = float(jnp.max(jnp.abs(y_pred - y_ref)))
    assert bool(jnp.allclose(y_pred, y_ref, rtol=2e-2, atol=2e-2)), max_err

    print("KERNEL_OK")
</pallas_src>

<mosaic_0001>
module attributes {stable_mosaic.version = 11 : i64} {
  func.func @kernel(%arg0: i32, %arg1: memref<16x5xf32, #tpu.memory_space<vmem>>, %arg2: memref<16x16xf32, #tpu.memory_space<vmem>>, %arg3: memref<4x8xf32, #tpu.memory_space<vmem>>, %arg4: memref<8x2xf32, #tpu.memory_space<vmem>>, %arg5: memref<1x8xf32, #tpu.memory_space<vmem>>, %arg6: memref<8x8xf32, #tpu.memory_space<vmem>>, %arg7: memref<8x2xf32, #tpu.memory_space<vmem>>, %arg8: memref<1x8xf32, #tpu.memory_space<vmem>>, %arg9: memref<20x20xf32, #tpu.memory_space<vmem>>, %arg10: memref<20x2xf32, #tpu.memory_space<vmem>>, %arg11: memref<1x20xf32, #tpu.memory_space<vmem>>, %arg12: memref<20x1xf32, #tpu.memory_space<vmem>>, %arg13: memref<1x2xf32, #tpu.memory_space<vmem>>, %arg14: memref<1x1xf32, #tpu.memory_space<vmem>>, %arg15: memref<16x3xf32, #tpu.memory_space<vmem>>, %arg16: memref<16x5xf32, #tpu.memory_space<vmem>>) attributes {dimension_semantics = [#tpu.dimension_semantics<arbitrary>], iteration_bounds = array<i64: 3>, scalar_prefetch = 0 : i64, scratch_operands = 1 : i64, tpu.core_type = #tpu.core_type<tc>, window_params = [{pipeline_mode = #tpu.pipeline_mode<synchronous>, transform_indices = @transform_0, window_bounds = array<i64: 16, 5>}, {pipeline_mode = #tpu.pipeline_mode<synchronous>, transform_indices = @transform_1, window_bounds = array<i64: 16, 16>}, {pipeline_mode = #tpu.pipeline_mode<synchronous>, transform_indices = @transform_2, window_bounds = array<i64: 4, 8>}, {pipeline_mode = #tpu.pipeline_mode<synchronous>, transform_indices = @transform_3, window_bounds = array<i64: 8, 2>}, {pipeline_mode = #tpu.pipeline_mode<synchronous>, transform_indices = @transform_4, window_bounds = array<i64: 1, 8>}, {pipeline_mode = #tpu.pipeline_mode<synchronous>, transform_indices = @transform_5, window_bounds = array<i64: 8, 8>}, {pipeline_mode = #tpu.pipeline_mode<synchronous>, transform_indices = @transform_6, window_bounds = array<i64: 8, 2>}, {pipeline_mode = #tpu.pipeline_mode<synchronous>, transform_indices = @transform_7, window_bounds = array<i64: 1, 8>}, {pipeline_mode = #tpu.pipeline_mode<synchronous>, transform_indices = @transform_8, window_bounds = array<i64: 20, 20>}, {pipeline_mode = #tpu.pipeline_mode<synchronous>, transform_indices = @transform_9, window_bounds = array<i64: 20, 2>}, {pipeline_mode = #tpu.pipeline_mode<synchronous>, transform_indices = @transform_10, window_bounds = array<i64: 1, 20>}, {pipeline_mode = #tpu.pipeline_mode<synchronous>, transform_indices = @transform_11, window_bounds = array<i64: 20, 1>}, {pipeline_mode = #tpu.pipeline_mode<synchronous>, transform_indices = @transform_12, window_bounds = array<i64: 1, 2>}, {pipeline_mode = #tpu.pipeline_mode<synchronous>, transform_indices = @transform_13, window_bounds = array<i64: 1, 1>}, {pipeline_mode = #tpu.pipeline_mode<synchronous>, transform_indices = @transform_14, window_bounds = array<i64: 16, 3>}]} {
    %c0_i32 = arith.constant 0 : i32
    %0 = arith.cmpi eq, %arg0, %c0_i32 : i32
    %1 = arith.extui %0 : i1 to i32
    %c0_i32_0 = arith.constant 0 : i32
    %2 = arith.cmpi ne, %1, %c0_i32_0 : i32
    scf.if %2 {
      %c0_71 = arith.constant 0 : index
      %c0_72 = arith.constant 0 : index
      %165 = vector.load %arg1[%c0_71, %c0_72] : memref<16x5xf32, #tpu.memory_space<vmem>>, vector<16x5xf32>
      %c0_73 = arith.constant 0 : index
      %c0_74 = arith.constant 0 : index
      %166 = vector.load %arg16[%c0_73, %c0_74] : memref<16x5xf32, #tpu.memory_space<vmem>>, vector<16x5xf32>
      tpu.vector_store %arg16[%c0_73, %c0_74], %165 {strides = array<i32>} : memref<16x5xf32, #tpu.memory_space<vmem>>, vector<16x5xf32>,
      %cst_75 = arith.constant 0.000000e+00 : f32
      %167 = vector.broadcast %cst_75 : f32 to vector<16x3xf32>
      %c0_76 = arith.constant 0 : index
      %c0_77 = arith.constant 0 : index
      %168 = vector.load %arg15[%c0_76, %c0_77] : memref<16x3xf32, #tpu.memory_space<vmem>>, vector<16x3xf32>
      tpu.vector_store %arg15[%c0_76, %c0_77], %167 {strides = array<i32>} : memref<16x3xf32, #tpu.memory_space<vmem>>, vector<16x3xf32>,
    } else {
    }
    %c0 = arith.constant 0 : index
    %c0_1 = arith.constant 0 : index
    %3 = vector.load %arg2[%c0, %c0_1] : memref<16x16xf32, #tpu.memory_space<vmem>>, vector<16x16xf32>
    %c0_2 = arith.constant 0 : index
    %c0_3 = arith.constant 0 : index
    %4 = vector.load %arg16[%c0_2, %c0_3] : memref<16x5xf32, #tpu.memory_space<vmem>>, vector<16x5xf32>
    %5 = vector.extract_strided_slice %4 {offsets = [0, 4], sizes = [16, 1], strides = [1, 1]} : vector<16x5xf32> to vector<16x1xf32>
    %6 = vector.extract_strided_slice %4 {offsets = [0, 1], sizes = [16, 4], strides = [1, 1]} : vector<16x5xf32> to vector<16x4xf32>
    %7 = vector.extract_strided_slice %4 {offsets = [0, 0], sizes = [16, 4], strides = [1, 1]} : vector<16x5xf32> to vector<16x4xf32>
    %8 = arith.subf %6, %7 : vector<16x4xf32>
    %c0_4 = arith.constant 0 : index
    %c0_5 = arith.constant 0 : index
    %9 = vector.load %arg3[%c0_4, %c0_5] : memref<4x8xf32, #tpu.memory_space<vmem>>, vector<4x8xf32>
    %cst = arith.constant dense<0.000000e+00> : vector<16x8xf32>
    %10 = tpu.matmul %8, %9, %cst {dimension_numbers = #tpu.dot_dimension_numbers<[1], [0], [0], [1], [0, 0, 1, 1], [], []>} : vector<16x4xf32>, vector<4x8xf32>, vector<16x8xf32> -> vector<16x8xf32>
    %c0_6 = arith.constant 0 : index
    %c0_7 = arith.constant 0 : index
    %11 = vector.load %arg4[%c0_6, %c0_7] : memref<8x2xf32, #tpu.memory_space<vmem>>, vector<8x2xf32>
    %cst_8 = arith.constant dense<0.000000e+00> : vector<16x2xf32>
    %12 = tpu.matmul %10, %11, %cst_8 {dimension_numbers = #tpu.dot_dimension_numbers<[1], [0], [0], [1], [0, 0, 1, 1], [], []>} : vector<16x8xf32>, vector<8x2xf32>, vector<16x2xf32> -> vector<16x2xf32>
    %13 = vector.extract_strided_slice %12 {offsets = [0, 0], sizes = [16, 1], strides = [1, 1]} : vector<16x2xf32> to vector<16x1xf32>
    %14 = vector.extract_strided_slice %12 {offsets = [0, 1], sizes = [16, 1], strides = [1, 1]} : vector<16x2xf32> to vector<16x1xf32>
    %15 = tpu.transpose %14, [1, 0] : vector<16x1xf32> -> vector<1x16xf32>
    %16 = vector.broadcast %13 : vector<16x1xf32> to vector<16x16xf32>
    %17 = vector.broadcast %15 : vector<1x16xf32> to vector<16x16xf32>
    %18 = arith.addf %16, %17 : vector<16x16xf32>
    %cst_9 = arith.constant 0.000000e+00 : f32
    %19 = vector.broadcast %cst_9 : f32 to vector<16x16xf32>
    %20 = arith.cmpf ogt, %18, %19 : vector<16x16xf32>
    %cst_10 = arith.constant 2.000000e-01 : f32
    %21 = vector.broadcast %cst_10 : f32 to vector<16x16xf32>
    %22 = arith.mulf %21, %18 : vector<16x16xf32>
    %23 = arith.select %20, %18, %22 : vector<16x16xi1>, vector<16x16xf32>
    %24 = arith.addf %23, %3 : vector<16x16xf32>
    %cst_11 = arith.constant dense<0xFF800000> : vector<16xf32>
    %25 = vector.multi_reduction <maximumf>, %24, %cst_11 [1] : vector<16x16xf32> to vector<16xf32>
    %26 = vector.shape_cast %25 : vector<16xf32> to vector<16x1xf32>
    %27 = vector.broadcast %26 : vector<16x1xf32> to vector<16x16xf32>
    %28 = arith.subf %24, %27 : vector<16x16xf32>
    %29 = math.exp %28 : vector<16x16xf32>
    %cst_12 = arith.constant dense<0.000000e+00> : vector<16xf32>
    %30 = vector.multi_reduction <add>, %29, %cst_12 [1] : vector<16x16xf32> to vector<16xf32>
    %31 = vector.shape_cast %30 : vector<16xf32> to vector<16x1xf32>
    %cst_13 = arith.constant 9.99999968E-21 : f32
    %32 = vector.broadcast %cst_13 : f32 to vector<16x1xf32>
    %33 = arith.maximumf %31, %32 : vector<16x1xf32>
    %34 = tpu.reciprocal %33 {approx = true} : vector<16x1xf32> -> vector<16x1xf32>
    %35 = vector.broadcast %34 : vector<16x1xf32> to vector<16x16xf32>
    %36 = arith.mulf %29, %35 : vector<16x16xf32>
    %cst_14 = arith.constant dense<0.000000e+00> : vector<16x8xf32>
    %37 = tpu.matmul %36, %10, %cst_14 {dimension_numbers = #tpu.dot_dimension_numbers<[1], [0], [0], [1], [0, 0, 1, 1], [], []>} : vector<16x16xf32>, vector<16x8xf32>, vector<16x8xf32> -> vector<16x8xf32>
    %c0_15 = arith.constant 0 : index
    %c0_16 = arith.constant 0 : index
    %38 = vector.load %arg5[%c0_15, %c0_16] : memref<1x8xf32, #tpu.memory_space<vmem>>, vector<1x8xf32>
    %39 = vector.broadcast %38 : vector<1x8xf32> to vector<16x8xf32>
    %40 = arith.addf %37, %39 : vector<16x8xf32>
    %cst_17 = arith.constant 0.000000e+00 : f32
    %41 = vector.broadcast %cst_17 : f32 to vector<16x8xf32>
    %42 = arith.cmpf ogt, %40, %41 : vector<16x8xf32>
    %cst_18 = arith.constant 0.00999999977 : f32
    %43 = vector.broadcast %cst_18 : f32 to vector<16x8xf32>
    %44 = arith.mulf %43, %40 : vector<16x8xf32>
    %45 = arith.select %42, %40, %44 : vector<16x8xi1>, vector<16x8xf32>
    %c0_19 = arith.constant 0 : index
    %c0_20 = arith.constant 0 : index
    %46 = vector.load %arg6[%c0_19, %c0_20] : memref<8x8xf32, #tpu.memory_space<vmem>>, vector<8x8xf32>
    %cst_21 = arith.constant dense<0.000000e+00> : vector<16x8xf32>
    %47 = tpu.matmul %45, %46, %cst_21 {dimension_numbers = #tpu.dot_dimension_numbers<[1], [0], [0], [1], [0, 0, 1, 1], [], []>} : vector<16x8xf32>, vector<8x8xf32>, vector<16x8xf32> -> vector<16x8xf32>
    %c0_22 = arith.constant 0 : index
    %c0_23 = arith.constant 0 : index
    %48 = vector.load %arg7[%c0_22, %c0_23] : memref<8x2xf32, #tpu.memory_space<vmem>>, vector<8x2xf32>
    %cst_24 = arith.constant dense<0.000000e+00> : vector<16x2xf32>
    %49 = tpu.matmul %47, %48, %cst_24 {dimension_numbers = #tpu.dot_dimension_numbers<[1], [0], [0], [1], [0, 0, 1, 1], [], []>} : vector<16x8xf32>, vector<8x2xf32>, vector<16x2xf32> -> vector<16x2xf32>
    %50 = vector.extract_strided_slice %49 {offsets = [0, 0], sizes = [16, 1], strides = [1, 1]} : vector<16x2xf32> to vector<16x1xf32>
    %51 = vector.extract_strided_slice %49 {offsets = [0, 1], sizes = [16, 1], strides = [1, 1]} : vector<16x2xf32> to vector<16x1xf32>
    %52 = tpu.transpose %51, [1, 0] : vector<16x1xf32> -> vector<1x16xf32>
    %53 = vector.broadcast %50 : vector<16x1xf32> to vector<16x16xf32>
    %54 = vector.broadcast %52 : vector<1x16xf32> to vector<16x16xf32>
    %55 = arith.addf %53, %54 : vector<16x16xf32>
    %cst_25 = arith.constant 0.000000e+00 : f32
    %56 = vector.broadcast %cst_25 : f32 to vector<16x16xf32>
    %57 = arith.cmpf ogt, %55, %56 : vector<16x16xf32>
    %cst_26 = arith.constant 2.000000e-01 : f32
    %58 = vector.broadcast %cst_26 : f32 to vector<16x16xf32>
    %59 = arith.mulf %58, %55 : vector<16x16xf32>
    %60 = arith.select %57, %55, %59 : vector<16x16xi1>, vector<16x16xf32>
    %61 = arith.addf %60, %3 : vector<16x16xf32>
    %cst_27 = arith.constant dense<0xFF800000> : vector<16xf32>
    %62 = vector.multi_reduction <maximumf>, %61, %cst_27 [1] : vector<16x16xf32> to vector<16xf32>
    %63 = vector.shape_cast %62 : vector<16xf32> to vector<16x1xf32>
    %64 = vector.broadcast %63 : vector<16x1xf32> to vector<16x16xf32>
    %65 = arith.subf %61, %64 : vector<16x16xf32>
    %66 = math.exp %65 : vector<16x16xf32>
    %cst_28 = arith.constant dense<0.000000e+00> : vector<16xf32>
    %67 = vector.multi_reduction <add>, %66, %cst_28 [1] : vector<16x16xf32> to vector<16xf32>
    %68 = vector.shape_cast %67 : vector<16xf32> to vector<16x1xf32>
    %cst_29 = arith.constant 9.99999968E-21 : f32
    %69 = vector.broadcast %cst_29 : f32 to vector<16x1xf32>
    %70 = arith.maximumf %68, %69 : vector<16x1xf32>
    %71 = tpu.reciprocal %70 {approx = true} : vector<16x1xf32> -> vector<16x1xf32>
    %72 = vector.broadcast %71 : vector<16x1xf32> to vector<16x16xf32>
    %73 = arith.mulf %66, %72 : vector<16x16xf32>
    %cst_30 = arith.constant dense<0.000000e+00> : vector<16x8xf32>
    %74 = tpu.matmul %73, %47, %cst_30 {dimension_numbers = #tpu.dot_dimension_numbers<[1], [0], [0], [1], [0, 0, 1, 1], [], []>} : vector<16x16xf32>, vector<16x8xf32>, vector<16x8xf32> -> vector<16x8xf32>
    %c0_31 = arith.constant 0 : index
    %c0_32 = arith.constant 0 : index
    %75 = vector.load %arg8[%c0_31, %c0_32] : memref<1x8xf32, #tpu.memory_space<vmem>>, vector<1x8xf32>
    %76 = vector.broadcast %75 : vector<1x8xf32> to vector<16x8xf32>
    %77 = arith.addf %74, %76 : vector<16x8xf32>
    %cst_33 = arith.constant 0.000000e+00 : f32
    %78 = vector.broadcast %cst_33 : f32 to vector<16x8xf32>
    %79 = arith.cmpf ogt, %77, %78 : vector<16x8xf32>
    %cst_34 = arith.constant 0.00999999977 : f32
    %80 = vector.broadcast %cst_34 : f32 to vector<16x8xf32>
    %81 = arith.mulf %80, %77 : vector<16x8xf32>
    %82 = arith.select %79, %77, %81 : vector<16x8xi1>, vector<16x8xf32>
    %83 = tpu.concatenate %8, %45, %82 in 1 : vector<16x4xf32>, vector<16x8xf32>, vector<16x8xf32> -> vector<16x20xf32>
    %c0_35 = arith.constant 0 : index
    %c0_36 = arith.constant 0 : index
    %84 = vector.load %arg9[%c0_35, %c0_36] : memref<20x20xf32, #tpu.memory_space<vmem>>, vector<20x20xf32>
    %cst_37 = arith.constant dense<0.000000e+00> : vector<16x20xf32>
    %85 = tpu.matmul %83, %84, %cst_37 {dimension_numbers = #tpu.dot_dimension_numbers<[1], [0], [0], [1], [0, 0, 1, 1], [], []>} : vector<16x20xf32>, vector<20x20xf32>, vector<16x20xf32> -> vector<16x20xf32>
    %c0_38 = arith.constant 0 : index
    %c0_39 = arith.constant 0 : index
    %86 = vector.load %arg10[%c0_38, %c0_39] : memref<20x2xf32, #tpu.memory_space<vmem>>, vector<20x2xf32>
    %cst_40 = arith.constant dense<0.000000e+00> : vector<16x2xf32>
    %87 = tpu.matmul %85, %86, %cst_40 {dimension_numbers = #tpu.dot_dimension_numbers<[1], [0], [0], [1], [0, 0, 1, 1], [], []>} : vector<16x20xf32>, vector<20x2xf32>, vector<16x2xf32> -> vector<16x2xf32>
    %88 = vector.extract_strided_slice %87 {offsets = [0, 0], sizes = [16, 1], strides = [1, 1]} : vector<16x2xf32> to vector<16x1xf32>
    %89 = vector.extract_strided_slice %87 {offsets = [0, 1], sizes = [16, 1], strides = [1, 1]} : vector<16x2xf32> to vector<16x1xf32>
    %90 = tpu.transpose %89, [1, 0] : vector<16x1xf32> -> vector<1x16xf32>
    %91 = vector.broadcast %88 : vector<16x1xf32> to vector<16x16xf32>
    %92 = vector.broadcast %90 : vector<1x16xf32> to vector<16x16xf32>
    %93 = arith.addf %91, %92 : vector<16x16xf32>
    %cst_41 = arith.constant 0.000000e+00 : f32
    %94 = vector.broadcast %cst_41 : f32 to vector<16x16xf32>
    %95 = arith.cmpf ogt, %93, %94 : vector<16x16xf32>
    %cst_42 = arith.constant 2.000000e-01 : f32
    %96 = vector.broadcast %cst_42 : f32 to vector<16x16xf32>
    %97 = arith.mulf %96, %93 : vector<16x16xf32>
    %98 = arith.select %95, %93, %97 : vector<16x16xi1>, vector<16x16xf32>
    %99 = arith.addf %98, %3 : vector<16x16xf32>
    %cst_43 = arith.constant dense<0xFF800000> : vector<16xf32>
    %100 = vector.multi_reduction <maximumf>, %99, %cst_43 [1] : vector<16x16xf32> to vector<16xf32>
    %101 = vector.shape_cast %100 : vector<16xf32> to vector<16x1xf32>
    %102 = vector.broadcast %101 : vector<16x1xf32> to vector<16x16xf32>
    %103 = arith.subf %99, %102 : vector<16x16xf32>
    %104 = math.exp %103 : vector<16x16xf32>
    %cst_44 = arith.constant dense<0.000000e+00> : vector<16xf32>
    %105 = vector.multi_reduction <add>, %104, %cst_44 [1] : vector<16x16xf32> to vector<16xf32>
    %106 = vector.shape_cast %105 : vector<16xf32> to vector<16x1xf32>
    %cst_45 = arith.constant 9.99999968E-21 : f32
    %107 = vector.broadcast %cst_45 : f32 to vector<16x1xf32>
    %108 = arith.maximumf %106, %107 : vector<16x1xf32>
    %109 = tpu.reciprocal %108 {approx = true} : vector<16x1xf32> -> vector<16x1xf32>
    %110 = vector.broadcast %109 : vector<16x1xf32> to vector<16x16xf32>
    %111 = arith.mulf %104, %110 : vector<16x16xf32>
    %cst_46 = arith.constant dense<0.000000e+00> : vector<16x20xf32>
    %112 = tpu.matmul %111, %85, %cst_46 {dimension_numbers = #tpu.dot_dimension_numbers<[1], [0], [0], [1], [0, 0, 1, 1], [], []>} : vector<16x16xf32>, vector<16x20xf32>, vector<16x20xf32> -> vector<16x20xf32>
    %c0_47 = arith.constant 0 : index
    %c0_48 = arith.constant 0 : index
    %113 = vector.load %arg11[%c0_47, %c0_48] : memref<1x20xf32, #tpu.memory_space<vmem>>, vector<1x20xf32>
    %114 = vector.broadcast %113 : vector<1x20xf32> to vector<16x20xf32>
    %115 = arith.addf %112, %114 : vector<16x20xf32>
    %cst_49 = arith.constant 0.000000e+00 : f32
    %116 = vector.broadcast %cst_49 : f32 to vector<16x20xf32>
    %117 = arith.cmpf ogt, %115, %116 : vector<16x20xf32>
    %cst_50 = arith.constant 0.00999999977 : f32
    %118 = vector.broadcast %cst_50 : f32 to vector<16x20xf32>
    %119 = arith.mulf %118, %115 : vector<16x20xf32>
    %120 = arith.select %117, %115, %119 : vector<16x20xi1>, vector<16x20xf32>
    %c0_51 = arith.constant 0 : index
    %c0_52 = arith.constant 0 : index
    %121 = vector.load %arg12[%c0_51, %c0_52] : memref<20x1xf32, #tpu.memory_space<vmem>>, vector<20x1xf32>
    %cst_53 = arith.constant dense<0.000000e+00> : vector<16x1xf32>
    %122 = tpu.matmul %120, %121, %cst_53 {dimension_numbers = #tpu.dot_dimension_numbers<[1], [0], [0], [1], [0, 0, 1, 1], [], []>} : vector<16x20xf32>, vector<20x1xf32>, vector<16x1xf32> -> vector<16x1xf32>
    %c0_54 = arith.constant 0 : index
    %c0_55 = arith.constant 0 : index
    %123 = vector.load %arg13[%c0_54, %c0_55] : memref<1x2xf32, #tpu.memory_space<vmem>>, vector<1x2xf32>
    %cst_56 = arith.constant dense<0.000000e+00> : vector<16x2xf32>
    %124 = tpu.matmul %122, %123, %cst_56 {dimension_numbers = #tpu.dot_dimension_numbers<[1], [0], [0], [1], [0, 0, 1, 1], [], []>} : vector<16x1xf32>, vector<1x2xf32>, vector<16x2xf32> -> vector<16x2xf32>
    %125 = vector.extract_strided_slice %124 {offsets = [0, 0], sizes = [16, 1], strides = [1, 1]} : vector<16x2xf32> to vector<16x1xf32>
    %126 = vector.extract_strided_slice %124 {offsets = [0, 1], sizes = [16, 1], strides = [1, 1]} : vector<16x2xf32> to vector<16x1xf32>
    %127 = tpu.transpose %126, [1, 0] : vector<16x1xf32> -> vector<1x16xf32>
    %128 = vector.broadcast %125 : vector<16x1xf32> to vector<16x16xf32>
    %129 = vector.broadcast %127 : vector<1x16xf32> to vector<16x16xf32>
    %130 = arith.addf %128, %129 : vector<16x16xf32>
    %cst_57 = arith.constant 0.000000e+00 : f32
    %131 = vector.broadcast %cst_57 : f32 to vector<16x16xf32>
    %132 = arith.cmpf ogt, %130, %131 : vector<16x16xf32>
    %cst_58 = arith.constant 2.000000e-01 : f32
    %133 = vector.broadcast %cst_58 : f32 to vector<16x16xf32>
    %134 = arith.mulf %133, %130 : vector<16x16xf32>
    %135 = arith.select %132, %130, %134 : vector<16x16xi1>, vector<16x16xf32>
    %136 = arith.addf %135, %3 : vector<16x16xf32>
    %cst_59 = arith.constant dense<0xFF800000> : vector<16xf32>
    %137 = vector.multi_reduction <maximumf>, %136, %cst_59 [1] : vector<16x16xf32> to vector<16xf32>
    %138 = vector.shape_cast %137 : vector<16xf32> to vector<16x1xf32>
    %139 = vector.broadcast %138 : vector<16x1xf32> to vector<16x16xf32>
    %140 = arith.subf %136, %139 : vector<16x16xf32>
    %141 = math.exp %140 : vector<16x16xf32>
    %cst_60 = arith.constant dense<0.000000e+00> : vector<16xf32>
    %142 = vector.multi_reduction <add>, %141, %cst_60 [1] : vector<16x16xf32> to vector<16xf32>
    %143 = vector.shape_cast %142 : vector<16xf32> to vector<16x1xf32>
    %cst_61 = arith.constant 9.99999968E-21 : f32
    %144 = vector.broadcast %cst_61 : f32 to vector<16x1xf32>
    %145 = arith.maximumf %143, %144 : vector<16x1xf32>
    %146 = tpu.reciprocal %145 {approx = true} : vector<16x1xf32> -> vector<16x1xf32>
    %147 = vector.broadcast %146 : vector<16x1xf32> to vector<16x16xf32>
    %148 = arith.mulf %141, %147 : vector<16x16xf32>
    %cst_62 = arith.constant dense<0.000000e+00> : vector<16x1xf32>
    %149 = tpu.matmul %148, %122, %cst_62 {dimension_numbers = #tpu.dot_dimension_numbers<[1], [0], [0], [1], [0, 0, 1, 1], [], []>} : vector<16x16xf32>, vector<16x1xf32>, vector<16x1xf32> -> vector<16x1xf32>
    %c0_63 = arith.constant 0 : index
    %c0_64 = arith.constant 0 : index
    %150 = vector.load %arg14[%c0_63, %c0_64] : memref<1x1xf32, #tpu.memory_space<vmem>>, vector<1x1xf32>
    %151 = vector.broadcast %150 : vector<1x1xf32> to vector<16x1xf32>
    %152 = arith.addf %149, %151 : vector<16x1xf32>
    %153 = arith.addf %5, %152 : vector<16x1xf32>
    %154 = tpu.iota {dimensions = array<i32: 1>} : vector<16x3xi32>
    %155 = vector.broadcast %arg0 : i32 to vector<16x3xi32>
    %156 = arith.cmpi eq, %154, %155 : vector<16x3xi32>
    %c0_65 = arith.constant 0 : index
    %c0_66 = arith.constant 0 : index
    %157 = vector.load %arg15[%c0_65, %c0_66] : memref<16x3xf32, #tpu.memory_space<vmem>>, vector<16x3xf32>
    %158 = vector.shape_cast %153 : vector<16x1xf32> to vector<16x1xf32>
    %159 = vector.broadcast %158 : vector<16x1xf32> to vector<16x3xf32>
    %160 = arith.select %156, %159, %157 : vector<16x3xi1>, vector<16x3xf32>
    %c0_67 = arith.constant 0 : index
    %c0_68 = arith.constant 0 : index
    %161 = vector.load %arg15[%c0_67, %c0_68] : memref<16x3xf32, #tpu.memory_space<vmem>>, vector<16x3xf32>
    tpu.vector_store %arg15[%c0_67, %c0_68], %160 {strides = array<i32>} : memref<16x3xf32, #tpu.memory_space<vmem>>, vector<16x3xf32>,
    %162 = vector.extract_strided_slice %4 {offsets = [0, 1], sizes = [16, 4], strides = [1, 1]} : vector<16x5xf32> to vector<16x4xf32>
    %163 = tpu.concatenate %162, %153 in 1 : vector<16x4xf32>, vector<16x1xf32> -> vector<16x5xf32>
    %c0_69 = arith.constant 0 : index
    %c0_70 = arith.constant 0 : index
    %164 = vector.load %arg16[%c0_69, %c0_70] : memref<16x5xf32, #tpu.memory_space<vmem>>, vector<16x5xf32>
    tpu.vector_store %arg16[%c0_69, %c0_70], %163 {strides = array<i32>} : memref<16x5xf32, #tpu.memory_space<vmem>>, vector<16x5xf32>,
    return
  }
  func.func @transform_0(%arg0: i32) -> (i32, i32) {
    %c0_i32 = arith.constant 0 : i32
    %c0_i32_0 = arith.constant 0 : i32
    %c0_i32_1 = arith.constant 0 : i32
    return %c0_i32, %c0_i32_0 : i32, i32
  }
  func.func @transform_1(%arg0: i32) -> (i32, i32) {
    %c0_i32 = arith.constant 0 : i32
    %c0_i32_0 = arith.constant 0 : i32
    %c0_i32_1 = arith.constant 0 : i32
    return %c0_i32, %c0_i32_0 : i32, i32
  }
  func.func @transform_2(%arg0: i32) -> (i32, i32) {
    %c0_i32 = arith.constant 0 : i32
    %c0_i32_0 = arith.constant 0 : i32
    %c0_i32_1 = arith.constant 0 : i32
    return %c0_i32, %c0_i32_0 : i32, i32
  }
  func.func @transform_3(%arg0: i32) -> (i32, i32) {
    %c0_i32 = arith.constant 0 : i32
    %c0_i32_0 = arith.constant 0 : i32
    %c0_i32_1 = arith.constant 0 : i32
    return %c0_i32, %c0_i32_0 : i32, i32
  }
  func.func @transform_4(%arg0: i32) -> (i32, i32) {
    %c0_i32 = arith.constant 0 : i32
    %c0_i32_0 = arith.constant 0 : i32
    %c0_i32_1 = arith.constant 0 : i32
    return %c0_i32, %c0_i32_0 : i32, i32
  }
  func.func @transform_5(%arg0: i32) -> (i32, i32) {
    %c0_i32 = arith.constant 0 : i32
    %c0_i32_0 = arith.constant 0 : i32
    %c0_i32_1 = arith.constant 0 : i32
    return %c0_i32, %c0_i32_0 : i32, i32
  }
  func.func @transform_6(%arg0: i32) -> (i32, i32) {
    %c0_i32 = arith.constant 0 : i32
    %c0_i32_0 = arith.constant 0 : i32
    %c0_i32_1 = arith.constant 0 : i32
    return %c0_i32, %c0_i32_0 : i32, i32
  }
  func.func @transform_7(%arg0: i32) -> (i32, i32) {
    %c0_i32 = arith.constant 0 : i32
    %c0_i32_0 = arith.constant 0 : i32
    %c0_i32_1 = arith.constant 0 : i32
    return %c0_i32, %c0_i32_0 : i32, i32
  }
  func.func @transform_8(%arg0: i32) -> (i32, i32) {
    %c0_i32 = arith.constant 0 : i32
    %c0_i32_0 = arith.constant 0 : i32
    %c0_i32_1 = arith.constant 0 : i32
    return %c0_i32, %c0_i32_0 : i32, i32
  }
  func.func @transform_9(%arg0: i32) -> (i32, i32) {
    %c0_i32 = arith.constant 0 : i32
    %c0_i32_0 = arith.constant 0 : i32
    %c0_i32_1 = arith.constant 0 : i32
    return %c0_i32, %c0_i32_0 : i32, i32
  }
  func.func @transform_10(%arg0: i32) -> (i32, i32) {
    %c0_i32 = arith.constant 0 : i32
    %c0_i32_0 = arith.constant 0 : i32
    %c0_i32_1 = arith.constant 0 : i32
    return %c0_i32, %c0_i32_0 : i32, i32
  }
  func.func @transform_11(%arg0: i32) -> (i32, i32) {
    %c0_i32 = arith.constant 0 : i32
    %c0_i32_0 = arith.constant 0 : i32
    %c0_i32_1 = arith.constant 0 : i32
    return %c0_i32, %c0_i32_0 : i32, i32
  }
  func.func @transform_12(%arg0: i32) -> (i32, i32) {
    %c0_i32 = arith.constant 0 : i32
    %c0_i32_0 = arith.constant 0 : i32
    %c0_i32_1 = arith.constant 0 : i32
    return %c0_i32, %c0_i32_0 : i32, i32
  }
  func.func @transform_13(%arg0: i32) -> (i32, i32) {
    %c0_i32 = arith.constant 0 : i32
    %c0_i32_0 = arith.constant 0 : i32
    %c0_i32_1 = arith.constant 0 : i32
    return %c0_i32, %c0_i32_0 : i32, i32
  }
  func.func @transform_14(%arg0: i32) -> (i32, i32) {
    %c0_i32 = arith.constant 0 : i32
    %c0_i32_0 = arith.constant 0 : i32
    %c0_i32_1 = arith.constant 0 : i32
    return %c0_i32, %c0_i32_0 : i32, i32
  }
}

</mosaic_0001>

<bundles_post_ra>
// kernel: tpu_custom_call.1
= control target key start
LH: loop header
LB: loop body
LE: loop exit
PB: predicated region body
PF: predicated region fallthrough
CT: control target
= control target key end

     0   :  { %s1478_s15 = smov 0   ;;  %s1670_s0 = inlined_call_operand.vmem [shape: f32[16,5], index: 0, kind: input, shape index: {}]   ;;  %s1671_s1 = inlined_call_operand.vmem [shape: f32[16,16], index: 1, kind: input, shape index: {}]   ;;  %s1672_s2 = inlined_call_operand.vmem [shape: f32[4,8], index: 2, kind: input, shape index: {}]   ;;  %s1673_s3 = inlined_call_operand.vmem [shape: f32[8,2], index: 3, kind: input, shape index: {}]   ;;  %s1674_s4 = inlined_call_operand.vmem [shape: f32[1,8], index: 4, kind: input, shape index: {}]   ;;  %s1675_s5 = inlined_call_operand.vmem [shape: f32[8,8], index: 5, kind: input, shape index: {}]   ;;  %s1676_s6 = inlined_call_operand.vmem [shape: f32[8,2], index: 6, kind: input, shape index: {}]   ;;  %s1677_s7 = inlined_call_operand.vmem [shape: f32[1,8], index: 7, kind: input, shape index: {}]   ;;  %s1678_s8 = inlined_call_operand.vmem [shape: f32[20,20], index: 8, kind: input, shape index: {}]   ;;  %s1679_s9 = inlined_call_operand.vmem [shape: f32[20,2], index: 9, kind: input, shape index: {}]   ;;  %s1680_s10 = inlined_call_operand.vmem [shape: f32[1,20], index: 10, kind: input, shape index: {}]   ;;  %s1681_s11 = inlined_call_operand.vmem [shape: f32[20,1], index: 11, kind: input, shape index: {}]   ;;  %s1682_s12 = inlined_call_operand.vmem [shape: f32[1,2], index: 12, kind: input, shape index: {}]   ;;  %s1683_s13 = inlined_call_operand.<no memory space> [shape: f32[1,1], index: 13, kind: input, shape index: {}]   ;;  %s1684_s14 = inlined_call_operand.vmem [shape: f32[16,3], index: 14, kind: output, shape index: {}]  }
   0x1   :  { %v19_v0 = vstv %s1683_s13 }
   0x2   :  { %20 = vst [vmem:[#allocation3] sm:$0x1] %v19_v0 }
   0x3 LB: > { %s1294_s16 = sadd.s32 4294967295, %s1391_s15   ;;  %p1296_p0 = scmp.ge.s32.totalorder %s1391_s15, 1  ;;  %s1391_s15 = sphi %s1478_s15, %s26_s15  }
   0x4   : > { %p399_p1 = scmp.lt.s32.totalorder %s1391_s15, 4 }
   0x6   : > { %p400_p2 = pnand %p1296_p0, %p399_p1 }
   0x7   : > { %p1297_p3 = scmp.ne.s32.totalorder (!%p400_p2), %s1294_s16, 0 }
   0x8   : > { %403 = sbr.rel (%p400_p2) target bundleno = 4326 (0x10e6), region = 76 }
   0xd   : > { %438 = sbr.rel (%p1297_p3) target bundleno = 23 (0x17), region = 80 }
  0x12   : > { %v439_v1 = vld [vmem:[%s1670_s0] sm:$0xff]  ;;  %vm441_vm0 = vcmask 39936   ;;  %v440_v2 = vld [vmem:[%s1670_s0 + $0x8] sm:$0xff]  ;;  %vm444_vm1 = vcmask 23552   ;;  %v1393_v3 = vmov 0.0  }
  0x13   : > { %442 = vst.msk [vmem:[#allocation2] sm:$0xff] %vm441_vm0, %v439_v1 }
  0x14   : > { %443 = vst.msk [vmem:[#allocation2 + $0x8] sm:$0xff] %vm441_vm0, %v440_v2 }
  0x15   : > { %445 = vst.msk [vmem:[%s1684_s14] sm:$0xff] %vm444_vm1, %v1393_v3 }
  0x16   : > { %446 = vst.msk [vmem:[%s1684_s14 + $0x8] sm:$0xff] %vm444_vm1, %v1393_v3 }
  0x17 PF: > { %s1394_s24 = smov 1   ;;  %v461_v6 = vld [vmem:[%s1672_s2] sm:$0xf]  ;;  %vm473_vm2 = vcmask 1043456   ;;  %s1395_s27 = smov 127   ;;  %vm468_vm3 = vcmask 31744  }
  0x18   : > { %1298 = vmatpush.msk.msra.mxu0 %vm473_vm2, %v461_v6  ;;  %v500_v13 = vld [vmem:[%s1673_s3] sm:$0xff]  ;;  %v1396_v14 = vmov 0   ;;  %vm501_vm4 = vcmask 64512   ;;  %v1532_v27 = vld [vmem:[%s1671_s1 + $0x8] sm:$0xff]  ;;  %vm590_vm7 = vcmask 130048   ;;  %s1397_s25 = smov 4  }
  0x19   : > { %523 = vmatpush.msra.mxu1 %v500_v13  ;;  %1345 = vset.pattern.permute.xlu0 %v1396_v14  ;;  %v1537_v28 = vld [vmem:[%s1671_s1] sm:$0xff]  ;;  %s1398_s18 = smov 12   ;;  %vm854_vm14 = vcmask 97280   ;;  %vm860_vm15 = vcmask 162816  }
  0x1a   : > { %v1500_v4 = vld [vmem:[#allocation2] sm:$0xff]  ;;  %1346 = vset.pattern.permute.xlu1 %v1396_v14 }
  0x1b   : > { %453 = vrot.lane.b32.xlu0 %v1500_v4, %s1394_s24  ;;  %v1503_v5 = vld [vmem:[#allocation2 + $0x8] sm:$0xff]  ;;  %v654_v55 = vld [vmem:[%s1675_s5] sm:$0xff] }
  0x1c   : > { %676 = vmatpush.msra.mxu3 %v654_v55  ;;  %v684_v56 = vld [vmem:[%s1676_s6] sm:$0xff] }
  0x1d   : > { %706 = vmatpush.msrb.mxu0 %v684_v56  ;;  %v1349_v57 = vld [vmem:[%s1674_s4] ss:$0 sm:$0xff] }
  0x23   : > { %455 = vrot.lane.b32.xlu0 %v1503_v5, %s1394_s24 }
  0x8d   : > { %v454_v7 = vpop.permute.xlu0 %453 }
  0x8e   : > { %v459_v8 = vsub.f32 %v1500_v4, %v454_v7 }
  0x90   : > { %464 = vrot.lane.b32.xlu1 %v459_v8, %s1395_s27 }
  0x95   : > { %v456_v9 = vpop.permute.xlu0 %455 }
  0x96   : > { %v460_v10 = vsub.f32 %v1503_v5, %v456_v9 }
  0x98   : > { %466 = vrot.lane.b32.xlu1 %v460_v10, %s1395_s27 }
 0x102   : > { %v1514_v11 = vpop.permute.xlu1 %464 }
 0x103   : > { %1299 = vmatmul.msk.f32.vlgmr.msra.gmra.mxu0 %vm468_vm3, %v1514_v11 }
 0x10a   : > { %v1518_v12 = vpop.permute.xlu1 %466 }
 0x10b   : > { %1300 = vmatmul.msk.f32.gmra.mxu0 %vm468_vm3, %v1518_v12 }
 0x180   : > { %v494_v15 = vpop.f32.mrf.mxu0 }
 0x181   : > { %1301 = vmatmul.msk.f32.vlgmr.msra.gmra.mxu1 %vm501_vm4, %v494_v15 }
 0x188   : > { %v497_v16 = vpop.f32.mrf.mxu0 }
 0x189   : > { %1302 = vmatmul.msk.f32.gmra.mxu1 %vm501_vm4, %v497_v16  ;;  %639 = vmatpush.msra.mxu2 %v497_v16 }
 0x18b   : > { %640 = vmatpush.msra.mxu2 %v494_v15 }
 0x1fe   : > { %v525_v17 = vpop.f32.mrf.mxu1 }
 0x1ff   : > { %572 = vperm.xlu0 %1345, %v525_v17   ;;  %533 = vrot.lane.b32.xlu2 %v525_v17, %s1395_s27 }
 0x206   : > { %v528_v18 = vpop.f32.mrf.mxu1 }
 0x207   : > { %576 = vperm.xlu1 %1346, %v528_v18   ;;  %535 = vrot.lane.b32.xlu2 %v528_v18, %s1395_s27 }
 0x259   : > { %v534_v19 = vpop.permute.xlu2 %533 }
 0x25a   : > { %539 = vxpose.xlu2.b32.start [1/2] (short) (narrow) %v534_v19, 8 }
 0x261   : > { %v536_v20 = vpop.permute.xlu2 %535 }
 0x262   : > { %540 = vxpose.xlu2.b32.end [2/2] (short) (narrow) %v536_v20, 8 }
 0x271   : > { %v573_v23 = vpop.permute.xlu0 %572 }
 0x279   : > { %v577_v24 = vpop.permute.xlu1 %576 }
 0x2c4   : > { %1347 = vset.pattern.permute.xlu2 %v1396_v14 }
 0x2f3   : > { %v555_v21 = vpop.trf.xlu2 }
 0x2f4   : > { %v579_v22 = vperm.slane %v555_v21, 0 }
 0x2f6   : > { %v580_v25 = vadd.f32 %v579_v22, %v573_v23  ;;  %v581_v26 = vadd.f32 %v579_v22, %v577_v24 }
 0x2f8   : > { %v584_v29 = vmul.f32 0.2, %v580_v25  ;;  %v585_v30 = vmul.f32 0.2, %v581_v26  ;;  %vm583_vm5 = vcmp.gt.f32.partialorder %v581_v26, 0.0  ;;  %vm582_vm6 = vcmp.gt.f32.partialorder %v580_v25, 0.0 }
 0x2fa   : > { %v587_v31 = vsel %vm583_vm5, %v581_v26, %v585_v30  ;;  %v586_v32 = vsel %vm582_vm6, %v580_v25, %v584_v29  ;;  %vm1086_vm6 = vcmask 7168  }
 0x2fb   : > { %v589_v33 = vadd.f32 %v587_v31, %v1532_v27  ;;  %v588_v34 = vadd.f32 %v586_v32, %v1537_v28 }
 0x2fd   : > { %v594_v35 = vsel %vm590_vm7, %v589_v33, -inf  ;;  %v591_v36 = vsel %vm590_vm7, %v588_v34, -inf }
 0x2fe   : > { %595 = vmax.xlane.f32.xlu0 %v594_v35  ;;  %592 = vmax.xlane.f32.xlu1 %v591_v36 }
 0x371   : > { %v596_v37 = vpop.xlane.xlu0 %595  ;;  %v593_v38 = vpop.xlane.xlu1 %592 }
 0x372   : > { %v598_v39 = vsub.f32 %v589_v33, %v596_v37  ;;  %v597_v40 = vsub.f32 %v588_v34, %v593_v38 }
 0x374   : > { %v601_v41 = vmul.f32 1.442695, %v598_v39  ;;  %v599_v42 = vmul.f32 1.442695, %v597_v40 }
 0x376   : > { %1353 = vpow2.f32 %v601_v41 }
 0x377   : > { %1355 = vpow2.f32 %v599_v42 }
 0x37c   : > { %v1354_v43 = vpop.eup %1353 }
 0x37d   : > { %v1356_v44 = vpop.eup %1355  ;;  %v606_v45 = vsel %vm590_vm7, %v1354_v43, 0.0 }
 0x37e   : > { %607 = vadd.xlane.f32.xlu1 %v606_v45  ;;  %v603_v46 = vsel %vm590_vm7, %v1356_v44, 0.0 }
 0x37f   : > { %604 = vadd.xlane.f32.xlu2 %v603_v46  ;;  %v859_v46 = vld [vmem:[%s1678_s8 + $0x10] sm:$0xf] }
 0x380   : > { %1311 = vmatpush.msk.msrb.mxu3 %vm473_vm2, %v859_v46 }
 0x3f1   : > { %v608_v49 = vpop.xlane.xlu1 %607 }
 0x3f2   : > { %v605_v47 = vpop.xlane.xlu2 %604  ;;  %v610_v50 = vmax.f32 %v608_v49, 1e-20 }
 0x3f3   : > { %v609_v48 = vmax.f32 %v605_v47, 1e-20  ;;  %v858_v47 = vld [vmem:[%s1678_s8 + $0x8] sm:$0xff] }
 0x3f4   : > { %884 = vmatpush.msrb.mxu3 %v858_v47 }
 0x3f5   : > { %1357 = vrcp.f32 %v609_v48  ;;  %v1350_v48 = vld [vmem:[%s1677_s7] ss:$0 sm:$0xff] }
 0x3f6   : > { %1359 = vrcp.f32 %v610_v50 }
 0x3fb   : > { %v1358_v51 = vpop.eup %1357 }
 0x3fc   : > { %v613_v52 = vmul.f32 %v1358_v51, %v1356_v44  ;;  %v1360_v53 = vpop.eup %1359 }
 0x3fd   : > { %v614_v54 = vmul.f32 %v1360_v53, %v1354_v43 }
 0x3fe   : > { %1303 = vmatmul.msk.f32.vlgmr.msra.gmra.mxu2 %vm590_vm7, %v613_v52 }
 0x406   : > { %1304 = vmatmul.msk.f32.gmra.mxu2 %vm590_vm7, %v614_v54 }
 0x481   : > { %v642_v58 = vpop.f32.mrf.mxu2 }
 0x482   : > { %v643_v59 = vadd.f32 %v1349_v57, %v642_v58 }
 0x484   : > { %v650_v60 = vmul.f32 0.01, %v643_v59  ;;  %vm648_vm8 = vcmp.gt.f32.partialorder %v643_v59, 0.0 }
 0x486   : > { %v652_v61 = vsel %vm648_vm8, %v643_v59, %v650_v60 }
 0x487   : > { %1305 = vmatmul.msk.f32.vlgmr.msra.gmra.mxu3 %vm501_vm4, %v652_v61 }
 0x489   : > { %v645_v62 = vpop.f32.mrf.mxu2 }
 0x48a   : > { %v646_v63 = vadd.f32 %v1349_v57, %v645_v62  ;;  %v857_v57 = vld [vmem:[%s1678_s8] sm:$0xff]  ;;  %v895_v62 = vld [vmem:[%s1679_s9 + $0x10] sm:$0xf] }
 0x48b   : > { %885 = vmatpush.msrb.mxu3 %v857_v57  ;;  %1314 = vmatpush.msk.msrb.mxu2 %vm473_vm2, %v895_v62 }
 0x48c   : > { %v651_v0 = vmul.f32 0.01, %v646_v63  ;;  %vm649_vm9 = vcmp.gt.f32.partialorder %v646_v63, 0.0 }
 0x48e   : > { %v653_v1 = vsel %vm649_vm9, %v646_v63, %v651_v0  ;;  %v894_v63 = vld [vmem:[%s1679_s9 + $0x8] sm:$0xff] }
 0x48f   : > { %1306 = vmatmul.msk.f32.gmra.mxu3 %vm501_vm4, %v653_v1  ;;  %919 = vmatpush.msrb.mxu2 %v894_v63 }
 0x50a   : > { %v678_v2 = vpop.f32.mrf.mxu3 }
 0x50b   : > { %1307 = vmatmul.msk.f32.vlgmr.msrb.gmra.mxu0 %vm501_vm4, %v678_v2 }
 0x512   : > { %v681_v3 = vpop.f32.mrf.mxu3 }
 0x513   : > { %1308 = vmatmul.msk.f32.gmra.mxu0 %vm501_vm4, %v681_v3  ;;  %821 = vmatpush.msrb.mxu1 %v681_v3  ;;  %v893_v3 = vld [vmem:[%s1679_s9] sm:$0xff] }
 0x514   : > { %920 = vmatpush.msrb.mxu2 %v893_v3 }
 0x515   : > { %822 = vmatpush.msrb.mxu1 %v678_v2 }
 0x588   : > { %v708_v6 = vpop.f32.mrf.mxu0 }
 0x589   : > { %716 = vrot.lane.b32.xlu0 %v708_v6, %s1395_s27 }
 0x590   : > { %v711_v7 = vpop.f32.mrf.mxu0 }
 0x591   : > { %755 = vperm.xlu0 %1345, %v708_v6   ;;  %718 = vrot.lane.b32.xlu1 %v711_v7, %s1395_s27 }
 0x599   : > { %759 = vperm.xlu1 %1346, %v711_v7  }
 0x5fb   : > { %v717_v8 = vpop.permute.xlu0 %716 }
 0x5fc   : > { %722 = vxpose.xlu0.b32.start [1/2] (short) (narrow) %v717_v8, 8 }
 0x603   : > { %v719_v9 = vpop.permute.xlu1 %718  ;;  %v756_v10 = vpop.permute.xlu0 %755 }
 0x604   : > { %723 = vxpose.xlu0.b32.end [2/2] (short) (narrow) %v719_v9, 8 }
 0x60b   : > { %v760_v15 = vpop.permute.xlu1 %759 }
 0x6a0   : > { %v738_v13 = vpop.trf.xlu0 }
 0x6a1   : > { %v762_v14 = vperm.slane %v738_v13, 0 }
 0x6a3   : > { %v763_v16 = vadd.f32 %v762_v14, %v756_v10  ;;  %v764_v17 = vadd.f32 %v762_v14, %v760_v15 }
 0x6a5   : > { %v767_v18 = vmul.f32 0.2, %v763_v16  ;;  %v768_v19 = vmul.f32 0.2, %v764_v17  ;;  %vm765_vm10 = vcmp.gt.f32.partialorder %v763_v16, 0.0  ;;  %vm766_vm11 = vcmp.gt.f32.partialorder %v764_v17, 0.0 }
 0x6a7   : > { %v769_v20 = vsel %vm765_vm10, %v763_v16, %v767_v18  ;;  %v770_v21 = vsel %vm766_vm11, %v764_v17, %v768_v19  ;;  %vm1264_vm11 = vcmask 23552  }
 0x6a8   : > { %v771_v22 = vadd.f32 %v769_v20, %v1537_v28  ;;  %v772_v23 = vadd.f32 %v770_v21, %v1532_v27 }
 0x6aa   : > { %v773_v24 = vsel %vm590_vm7, %v771_v22, -inf  ;;  %v776_v25 = vsel %vm590_vm7, %v772_v23, -inf }
 0x6ab   : > { %774 = vmax.xlane.f32.xlu1 %v773_v24  ;;  %777 = vmax.xlane.f32.xlu0 %v776_v25 }
 0x71e   : > { %v775_v26 = vpop.xlane.xlu1 %774  ;;  %v778_v29 = vpop.xlane.xlu0 %777 }
 0x71f   : > { %v779_v30 = vsub.f32 %v771_v22, %v775_v26  ;;  %v780_v32 = vsub.f32 %v772_v23, %v778_v29 }
 0x721   : > { %v781_v31 = vmul.f32 1.442695, %v779_v30  ;;  %v783_v33 = vmul.f32 1.442695, %v780_v32 }
 0x723   : > { %1361 = vpow2.f32 %v781_v31 }
 0x724   : > { %1363 = vpow2.f32 %v783_v33 }
 0x729   : > { %v1362_v34 = vpop.eup %1361 }
 0x72a   : > { %v785_v35 = vsel %vm590_vm7, %v1362_v34, 0.0  ;;  %v1364_v36 = vpop.eup %1363 }
 0x72b   : > { %786 = vadd.xlane.f32.xlu1 %v785_v35  ;;  %v788_v37 = vsel %vm590_vm7, %v1364_v36, 0.0 }
 0x733   : > { %789 = vadd.xlane.f32.xlu1 %v788_v37 }
 0x74c   : > { %838 = vrot.lane.b32.xlu1 %v652_v61, %s1397_s25 }
 0x754   : > { %840 = vrot.lane.b32.xlu1 %v653_v1, %s1397_s25 }
 0x79e   : > { %v787_v38 = vpop.xlane.xlu1 %786 }
 0x79f   : > { %v791_v39 = vmax.f32 %v787_v38, 1e-20 }
 0x7a1   : > { %1365 = vrcp.f32 %v791_v39  ;;  %v1052_v39 = vld [vmem:[%s1681_s11 + $0x10] sm:$0xf] }
 0x7a2   : > { %1319 = vmatpush.msk.msra.mxu1 %vm473_vm2, %v1052_v39  ;;  %vm1093_vm2 = vcmask 1040384  }
 0x7a6   : > { %v790_v40 = vpop.xlane.xlu1 %789 }
 0x7a7   : > { %v1366_v41 = vpop.eup %1365  ;;  %v792_v42 = vmax.f32 %v790_v40, 1e-20  ;;  %v1051_v40 = vld [vmem:[%s1681_s11 + $0x8] sm:$0xff] }
 0x7a8   : > { %v795_v43 = vmul.f32 %v1366_v41, %v1362_v34  ;;  %1076 = vmatpush.msra.mxu1 %v1051_v40 }
 0x7a9   : > { %1367 = vrcp.f32 %v792_v42 }
 0x7aa   : > { %1309 = vmatmul.msk.f32.vlgmr.msrb.gmra.mxu1 %vm590_vm7, %v795_v43 }
 0x7af   : > { %v1368_v44 = vpop.eup %1367 }
 0x7b0   : > { %v796_v45 = vmul.f32 %v1368_v44, %v1364_v36 }
 0x7b2   : > { %1310 = vmatmul.msk.f32.gmra.mxu1 %vm590_vm7, %v796_v45 }
 0x7be   : > { %v839_v58 = vpop.permute.xlu1 %838 }
 0x7bf   : > { %v852_v59 = vsel %vm468_vm3, %v1514_v11, %v839_v58 }
 0x7c6   : > { %v841_v0 = vpop.permute.xlu1 %840 }
 0x7c7   : > { %v853_v1 = vsel %vm468_vm3, %v1518_v12, %v841_v0 }
 0x827   : > { %v824_v49 = vpop.f32.mrf.mxu1 }
 0x828   : > { %v825_v50 = vadd.f32 %v1350_v48, %v824_v49  ;;  %v1050_v49 = vld [vmem:[%s1681_s11] sm:$0xff] }
 0x829   : > { %1077 = vmatpush.msra.mxu1 %v1050_v49 }
 0x82a   : > { %v832_v51 = vmul.f32 0.01, %v825_v50  ;;  %vm830_vm12 = vcmp.gt.f32.partialorder %v825_v50, 0.0 }
 0x82c   : > { %v834_v52 = vsel %vm830_vm12, %v825_v50, %v832_v51  ;;  %v1085_v50 = vld [vmem:[%s1682_s12] sm:$0x1] }
 0x82d   : > { %846 = vrot.lane.b32.xlu2 %v834_v52, %s1398_s18  ;;  %1322 = vmatpush.msk.msra.mxu3 %vm1093_vm2, %v1085_v50  ;;  %v1351_v51 = vld [vmem:[%s1680_s10] ss:$0 sm:$0xff]  ;;  %v1248_v50 = vstv %s1294_s16 }
 0x82f   : > { %v827_v53 = vpop.f32.mrf.mxu1 }
 0x830   : > { %v828_v54 = vadd.f32 %v1350_v48, %v827_v53 }
 0x832   : > { %v833_v55 = vmul.f32 0.01, %v828_v54  ;;  %vm831_vm13 = vcmp.gt.f32.partialorder %v828_v54, 0.0 }
 0x834   : > { %v835_v56 = vsel %vm831_vm13, %v828_v54, %v833_v55 }
 0x835   : > { %848 = vrot.lane.b32.xlu1 %v835_v56, %s1398_s18 }
 0x887   : > { %v847_v60 = vpop.permute.xlu2 %846 }
 0x888   : > { %v855_v61 = vsel %vm854_vm14, %v852_v59, %v847_v60 }
 0x889   : > { %1312 = vmatmul.msk.f32.vlgmr.msrb.gmra.mxu3 %vm860_vm15, %v855_v61 }
 0x8a7   : > { %v849_v11 = vpop.permute.xlu1 %848 }
 0x8a8   : > { %v856_v2 = vsel %vm854_vm14, %v853_v1, %v849_v11 }
 0x8a9   : > { %1313 = vmatmul.msk.f32.gmra.mxu3 %vm860_vm15, %v856_v2 }
 0x90c   : > { %v887_v6 = vpop.f32.mrf.mxu3 }
 0x90d   : > { %1315 = vmatmul.msk.f32.vlgmr.msrb.gmra.mxu2 %vm860_vm15, %v887_v6 }
 0x92c   : > { %v890_v7 = vpop.f32.mrf.mxu3 }
 0x92d   : > { %1316 = vmatmul.msk.f32.gmra.mxu2 %vm860_vm15, %v890_v7  ;;  %1035 = vmatpush.msra.mxu0 %v890_v7 }
 0x92f   : > { %1036 = vmatpush.msra.mxu0 %v887_v6 }
 0x990   : > { %v922_v8 = vpop.f32.mrf.mxu2 }
 0x991   : > { %930 = vrot.lane.b32.xlu2 %v922_v8, %s1395_s27 }
 0x999   : > { %969 = vperm.xlu2 %1347, %v922_v8  }
 0x9b0   : > { %v925_v12 = vpop.f32.mrf.mxu2 }
 0x9b1   : > { %932 = vrot.lane.b32.xlu1 %v925_v12, %s1395_s27 }
 0x9b9   : > { %973 = vperm.xlu1 %1346, %v925_v12  }
 0x9eb   : > { %v931_v9 = vpop.permute.xlu2 %930 }
 0x9ec   : > { %936 = vxpose.xlu2.b32.start [1/2] (short) (narrow) %v931_v9, 8 }
 0x9f3   : > { %v970_v13 = vpop.permute.xlu2 %969 }
 0xa23   : > { %v933_v10 = vpop.permute.xlu1 %932 }
 0xa24   : > { %937 = vxpose.xlu2.b32.end [2/2] (short) (narrow) %v933_v10, 8 }
 0xa2b   : > { %v974_v16 = vpop.permute.xlu1 %973 }
 0xab5   : > { %v952_v14 = vpop.trf.xlu2 }
 0xab6   : > { %v976_v15 = vperm.slane %v952_v14, 0 }
 0xab8   : > { %v977_v17 = vadd.f32 %v976_v15, %v970_v13  ;;  %v978_v18 = vadd.f32 %v976_v15, %v974_v16 }
 0xaba   : > { %v981_v19 = vmul.f32 0.2, %v977_v17  ;;  %v982_v20 = vmul.f32 0.2, %v978_v18  ;;  %vm979_vm0 = vcmp.gt.f32.partialorder %v977_v17, 0.0  ;;  %vm980_vm1 = vcmp.gt.f32.partialorder %v978_v18, 0.0 }
 0xabc   : > { %v983_v21 = vsel %vm979_vm0, %v977_v17, %v981_v19  ;;  %v984_v22 = vsel %vm980_vm1, %v978_v18, %v982_v20 }
 0xabd   : > { %v985_v23 = vadd.f32 %v983_v21, %v1537_v28  ;;  %v986_v24 = vadd.f32 %v984_v22, %v1532_v27 }
 0xabf   : > { %v987_v25 = vsel %vm590_vm7, %v985_v23, -inf  ;;  %v990_v26 = vsel %vm590_vm7, %v986_v24, -inf }
 0xac0   : > { %988 = vmax.xlane.f32.xlu1 %v987_v25  ;;  %991 = vmax.xlane.f32.xlu0 %v990_v26 }
 0xb33   : > { %v992_v29 = vpop.xlane.xlu0 %991  ;;  %v989_v30 = vpop.xlane.xlu1 %988 }
 0xb34   : > { %v994_v31 = vsub.f32 %v986_v24, %v992_v29  ;;  %v993_v32 = vsub.f32 %v985_v23, %v989_v30 }
 0xb36   : > { %v997_v33 = vmul.f32 1.442695, %v994_v31  ;;  %v995_v34 = vmul.f32 1.442695, %v993_v32 }
 0xb38   : > { %1369 = vpow2.f32 %v997_v33 }
 0xb39   : > { %1371 = vpow2.f32 %v995_v34 }
 0xb3e   : > { %v1370_v35 = vpop.eup %1369 }
 0xb3f   : > { %v1372_v36 = vpop.eup %1371  ;;  %v1002_v37 = vsel %vm590_vm7, %v1370_v35, 0.0 }
 0xb40   : > { %1003 = vadd.xlane.f32.xlu1 %v1002_v37  ;;  %v999_v38 = vsel %vm590_vm7, %v1372_v36, 0.0 }
 0xb41   : > { %1000 = vadd.xlane.f32.xlu2 %v999_v38 }
 0xbb3   : > { %v1004_v43 = vpop.xlane.xlu1 %1003 }
 0xbb4   : > { %v1001_v41 = vpop.xlane.xlu2 %1000  ;;  %v1006_v44 = vmax.f32 %v1004_v43, 1e-20 }
 0xbb5   : > { %v1005_v42 = vmax.f32 %v1001_v41, 1e-20  ;;  %v1399_v41 = vmov 4  }
 0xbb7   : > { %1373 = vrcp.f32 %v1005_v42 }
 0xbb8   : > { %1375 = vrcp.f32 %v1006_v44 }
 0xbbd   : > { %v1374_v45 = vpop.eup %1373 }
 0xbbe   : > { %v1009_v46 = vmul.f32 %v1374_v45, %v1372_v36  ;;  %v1376_v47 = vpop.eup %1375  ;;  %v1352_v36 = vld [vmem:[#allocation3] ss:$0 sm:$0xff] }
 0xbbf   : > { %v1010_v48 = vmul.f32 %v1376_v47, %v1370_v35 }
 0xbc0   : > { %1317 = vmatmul.msk.f32.vlgmr.msra.gmra.mxu0 %vm590_vm7, %v1009_v46 }
 0xbc8   : > { %1318 = vmatmul.msk.f32.gmra.mxu0 %vm590_vm7, %v1010_v48  ;;  %v1246_v48 = vlaneseq }
 0xbca   : > { %v1247_v49 = vand.u32 127, %v1246_v48 }
 0xbcc   : > { %vm1249_vm10 = vcmp.eq.s32.totalorder %v1247_v49, %v1248_v50 }
 0xc3d   : > { %v1038_v52 = vpop.f32.mrf.mxu0 }
 0xc3e   : > { %v1039_v53 = vadd.f32 %v1351_v51, %v1038_v52 }
 0xc40   : > { %vm1044_vm4 = vcmp.gt.f32.partialorder %v1039_v53, 0.0  ;;  %v1046_v54 = vmul.f32 0.01, %v1039_v53 }
 0xc42   : > { %v1048_v55 = vsel %vm1044_vm4, %v1039_v53, %v1046_v54 }
 0xc43   : > { %1320 = vmatmul.msk.f32.vlgmr.msra.gmra.mxu1 %vm860_vm15, %v1048_v55 }
 0xc45   : > { %v1041_v56 = vpop.f32.mrf.mxu0 }
 0xc46   : > { %v1042_v57 = vadd.f32 %v1351_v51, %v1041_v56 }
 0xc48   : > { %v1047_v58 = vmul.f32 0.01, %v1042_v57  ;;  %vm1045_vm5 = vcmp.gt.f32.partialorder %v1042_v57, 0.0 }
 0xc4a   : > { %v1049_v59 = vsel %vm1045_vm5, %v1042_v57, %v1047_v58 }
 0xc4b   : > { %1321 = vmatmul.msk.f32.gmra.mxu1 %vm860_vm15, %v1049_v59 }
 0xcc0   : > { %v1079_v60 = vpop.f32.mrf.mxu1 }
 0xcc1   : > { %1323 = vmatmul.msk.f32.vlgmr.msra.gmra.mxu3 %vm1086_vm6, %v1079_v60 }
 0xcc8   : > { %v1082_v61 = vpop.f32.mrf.mxu1 }
 0xcc9   : > { %1324 = vmatmul.msk.f32.gmra.mxu3 %vm1086_vm6, %v1082_v61  ;;  %1227 = vmatpush.msra.mxu2 %v1082_v61 }
 0xccb   : > { %1228 = vmatpush.msra.mxu2 %v1079_v60 }
 0xd44   : > { %v1114_v62 = vpop.f32.mrf.mxu3 }
 0xd45   : > { %1122 = vrot.lane.b32.xlu0 %v1114_v62, %s1395_s27 }
 0xd4c   : > { %v1117_v63 = vpop.f32.mrf.mxu3 }
 0xd4d   : > { %1161 = vperm.xlu0 %1345, %v1114_v62   ;;  %1124 = vrot.lane.b32.xlu1 %v1117_v63, %s1395_s27 }
 0xd55   : > { %1165 = vperm.xlu0 %1345, %v1117_v63  }
 0xd5d   : > { %1348 = vset.pattern.permute.xlu0 %v1399_v41 }
 0xdb7   : > { %v1123_v0 = vpop.permute.xlu0 %1122 }
 0xdb8   : > { %1128 = vxpose.xlu1.b32.start [1/2] (short) (narrow) %v1123_v0, 8 }
 0xdbf   : > { %v1125_v1 = vpop.permute.xlu1 %1124  ;;  %v1162_v11 = vpop.permute.xlu0 %1161 }
 0xdc0   : > { %1129 = vxpose.xlu1.b32.end [2/2] (short) (narrow) %v1125_v1, 8 }
 0xdc7   : > { %v1166_v6 = vpop.permute.xlu0 %1165 }
 0xe5c   : > { %v1144_v2 = vpop.trf.xlu1 }
 0xe5d   : > { %v1168_v3 = vperm.slane %v1144_v2, 0 }
 0xe5f   : > { %v1169_v7 = vadd.f32 %v1168_v3, %v1162_v11  ;;  %v1170_v8 = vadd.f32 %v1168_v3, %v1166_v6 }
 0xe61   : > { %v1173_v12 = vmul.f32 0.2, %v1169_v7  ;;  %vm1171_vm8 = vcmp.gt.f32.partialorder %v1169_v7, 0.0  ;;  %v1174_v9 = vmul.f32 0.2, %v1170_v8  ;;  %vm1172_vm9 = vcmp.gt.f32.partialorder %v1170_v8, 0.0 }
 0xe63   : > { %v1175_v10 = vsel %vm1171_vm8, %v1169_v7, %v1173_v12  ;;  %v1176_v15 = vsel %vm1172_vm9, %v1170_v8, %v1174_v9 }
 0xe64   : > { %v1177_v13 = vadd.f32 %v1175_v10, %v1537_v28  ;;  %v1178_v16 = vadd.f32 %v1176_v15, %v1532_v27 }
 0xe66   : > { %v1179_v14 = vsel %vm590_vm7, %v1177_v13, -inf  ;;  %v1182_v17 = vsel %vm590_vm7, %v1178_v16, -inf }
 0xe67   : > { %1180 = vmax.xlane.f32.xlu0 %v1179_v14 }
 0xe6f   : > { %1183 = vmax.xlane.f32.xlu0 %v1182_v17 }
 0xeda   : > { %v1181_v18 = vpop.xlane.xlu0 %1180 }
 0xedb   : > { %v1185_v19 = vsub.f32 %v1177_v13, %v1181_v18 }
 0xedd   : > { %v1187_v20 = vmul.f32 1.442695, %v1185_v19 }
 0xedf   : > { %1377 = vpow2.f32 %v1187_v20 }
 0xee2   : > { %v1184_v21 = vpop.xlane.xlu0 %1183 }
 0xee3   : > { %v1186_v22 = vsub.f32 %v1178_v16, %v1184_v21 }
 0xee5   : > { %v1378_v23 = vpop.eup %1377  ;;  %v1189_v24 = vmul.f32 1.442695, %v1186_v22 }
 0xee6   : > { %v1191_v28 = vsel %vm590_vm7, %v1378_v23, 0.0 }
 0xee7   : > { %1379 = vpow2.f32 %v1189_v24  ;;  %1192 = vadd.xlane.f32.xlu0 %v1191_v28 }
 0xeed   : > { %v1380_v25 = vpop.eup %1379 }
 0xeee   : > { %v1194_v26 = vsel %vm590_vm7, %v1380_v25, 0.0 }
 0xeef   : > { %1195 = vadd.xlane.f32.xlu1 %v1194_v26 }
 0xf5a   : > { %v1193_v27 = vpop.xlane.xlu0 %1192 }
 0xf5b   : > { %v1197_v29 = vmax.f32 %v1193_v27, 1e-20 }
 0xf5d   : > { %1381 = vrcp.f32 %v1197_v29 }
 0xf62   : > { %v1196_v30 = vpop.xlane.xlu1 %1195 }
 0xf63   : > { %v1382_v31 = vpop.eup %1381  ;;  %v1198_v32 = vmax.f32 %v1196_v30, 1e-20 }
 0xf64   : > { %v1201_v33 = vmul.f32 %v1382_v31, %v1378_v23 }
 0xf65   : > { %1383 = vrcp.f32 %v1198_v32 }
 0xf66   : > { %1325 = vmatmul.msk.f32.vlgmr.msra.gmra.mxu2 %vm590_vm7, %v1201_v33 }
 0xf6b   : > { %v1384_v34 = vpop.eup %1383 }
 0xf6c   : > { %v1202_v35 = vmul.f32 %v1384_v34, %v1380_v25 }
 0xf6e   : > { %1326 = vmatmul.msk.f32.gmra.mxu2 %vm590_vm7, %v1202_v35  ;;  %vm1275_vm7 = vcmask 39936  }
 0xfe9   : > { %v1230_v37 = vpop.f32.mrf.mxu2 }
 0xfea   : > { %v1231_v38 = vadd.f32 %v1352_v36, %v1230_v37 }
 0xfec   : > { %1238 = vrot.lane.b32.xlu0 %v1231_v38, %s1397_s25 }
 0xff1   : > { %v1233_v39 = vpop.f32.mrf.mxu2 }
 0xff2   : > { %v1234_v40 = vadd.f32 %v1352_v36, %v1233_v39 }
 0xff4   : > { %1240 = vrot.lane.b32.xlu2 %v1234_v40, %s1397_s25 }
 0xffc   : > { %1267 = vrot.lane.b32.xlu2 %v1500_v4, %s1395_s27 }
0x104e   : > { %v1241_v42 = vpop.permute.xlu2 %1240 }
0x104f   : > { %v1245_v47 = vadd.f32 %v1241_v42, %v1503_v5 }
0x1056   : > { %v1268_v44 = vpop.permute.xlu2 %1267 }
0x105e   : > { %v1239_v43 = vpop.permute.xlu0 %1238 }
0x105f   : > { %v1244_v45 = vadd.f32 %v1239_v43, %v1500_v4  ;;  %v1250_v4 = vld [vmem:[%s1684_s14] sm:$0xff] }
0x1061   : > { %v1273_v46 = vsel %vm468_vm3, %v1268_v44, %v1244_v45  ;;  %1254 = vperm.xlu0 %1348, %v1244_v45  }
0x1062   : > { %1276 = vst.msk [vmem:[#allocation2] sm:$0xff] %vm1275_vm7, %v1273_v46 }
0x1069   : > { %1259 = vperm.xlu0 %1348, %v1245_v47  }
0x1071   : > { %1269 = vrot.lane.b32.xlu0 %v1503_v5, %s1395_s27  ;;  %v1251_v5 = vld [vmem:[%s1684_s14 + $0x8] sm:$0xff] }
0x10d3   : > { %v1255_v51 = vpop.permute.xlu0 %1254 }
0x10d4   : > { %v1262_v52 = vsel %vm1249_vm10, %v1255_v51, %v1250_v4 }
0x10d5   : > { %1265 = vst.msk [vmem:[%s1684_s14] sm:$0xff] %vm1264_vm11, %v1262_v52 }
0x10db   : > { %v1260_v53 = vpop.permute.xlu0 %1259 }
0x10dc   : > { %v1263_v54 = vsel %vm1249_vm10, %v1260_v53, %v1251_v5 }
0x10dd   : > { %1266 = vst.msk [vmem:[%s1684_s14 + $0x8] sm:$0xff] %vm1264_vm11, %v1263_v54 }
0x10e3   : > { %v1270_v55 = vpop.permute.xlu0 %1269 }
0x10e4   : > { %v1274_v56 = vsel %vm468_vm3, %v1270_v55, %v1245_v47 }
0x10e5   : > { %1277 = vst.msk [vmem:[#allocation2 + $0x8] sm:$0xff] %vm1275_vm7, %v1274_v56 }
0x10e6 PF: > { %s26_s15 = sadd.s32 1, %s1391_s15  }
0x10e7   : > { %p23_p4 = scmp.ge.s32.totalorder %s26_s15, 5  }
0x10e9   :  { %25 = sbr.rel (!%p23_p4) target bundleno = 3 (0x3), region = 103 }

</bundles_post_ra>
